<compile_context>
chip_gen: v7x
topology: tpu7x:2x2x1
jax: 0.10.0
libtpu: 0.0.40
codegen_flags: <defaults>
</compile_context>

<pallas_src>
import math
import jax
import jax.numpy as jnp
from jax.experimental import pallas as pl
from jax.experimental.pallas import tpu as pltpu

# ---- model hyper-params (module defaults) ----------------------------------
HIDDEN_DIM = 50                      # self.hidden_dim
N_CLASSES = 2                        # self.n_classes
META_DIM = 4                         # self.meta_feature_dim
HIDDEN2 = math.ceil(HIDDEN_DIM / 2)  # 25

# ---- synthetic BERT stand-in sizes (small, deterministic) ------------------
BERT_DIM = 32
N_HEADS = 4
N_LAYERS = 12
SEQ_LEN = 8
VOCAB = 128
FFN_DIM = 64

# ---- kernel tiling ----------------------------------------------------------
H1_DIM = HIDDEN_DIM + META_DIM       # 54 : fused [text_hidden | meta_hidden]
OUT_W = 8                            # small f32 output slab (full-dim block)
TILE_B_MAX = 2048                    # batch rows per grid step (sweep 1024-4096;
                                     # v7x prefers the high end + n_tiles >= 2)


def _round_up(n, m):
    return ((n + m - 1) // m) * m


# =============================================================================
# Pallas kernel: the BERT_Rel_M MLP head
#   h1  = tanh(cls @ W1_text + meta @ W1_meta + b1)   (== block-diag W1, exact)
#   h2  = tanh(h1 @ W2 + b2)                          (hidden_layer on concat)
#   out = h2 @ W3 + b3                                (layer_output, 8-lane pad)
# =============================================================================
def _head_kernel(cls_ref, meta_ref, w1t_ref, w1m_ref, b1_ref,
                 w2_ref, b2_ref, w3_ref, b3_ref, out_ref):
    # Two dots against the text/meta row-blocks of the (virtual) block-diagonal
    # W1: exactly equivalent to concat(text_hidden, meta_hidden) pre-activation,
    # and removes the wrapper-side concat HBM round trip.
    h1 = jnp.tanh(
        jnp.dot(cls_ref[...], w1t_ref[...], preferred_element_type=jnp.float32)
        + jnp.dot(meta_ref[...], w1m_ref[...], preferred_element_type=jnp.float32)
        + b1_ref[...])
    h2 = jnp.tanh(
        jnp.dot(h1.astype(w2_ref.dtype), w2_ref[...],
                preferred_element_type=jnp.float32) + b2_ref[...])
    out_ref[...] = (
        jnp.dot(h2.astype(w3_ref.dtype), w3_ref[...],
                preferred_element_type=jnp.float32) + b3_ref[...])


def head_pallas(cls_rep, meta, hp):
    """Batched head: grid over batch tiles, VMEM-resident weights."""
    B = cls_rep.shape[0]
    b8 = _round_up(B, 8)
    tile_b = min(TILE_B_MAX, b8)          # adaptive: big tiles, no huge pad at small B
    n_tiles = pl.cdiv(b8, tile_b)
    b_pad = n_tiles * tile_b

    cls_b = cls_rep.astype(jnp.bfloat16)
    meta_b = meta.astype(jnp.bfloat16)
    if b_pad != B:
        cls_b = jnp.pad(cls_b, ((0, b_pad - B), (0, 0)))
        meta_b = jnp.pad(meta_b, ((0, b_pad - B), (0, 0)))

    def _act(width):
        return pl.BlockSpec((tile_b, width), lambda i: (i, 0))

    def _resident(shape):
        # constant block index -> fetched once, stays in VMEM across all tiles
        return pl.BlockSpec(shape, lambda i: (0, 0))

    grid_spec = pltpu.PrefetchScalarGridSpec(
        num_scalar_prefetch=0,
        grid=(n_tiles,),
        in_specs=[
            _act(BERT_DIM), _act(META_DIM),
            _resident((BERT_DIM, H1_DIM)), _resident((META_DIM, H1_DIM)),
            _resident((1, H1_DIM)),
            _resident((H1_DIM, HIDDEN2)), _resident((1, HIDDEN2)),
            _resident((HIDDEN2, OUT_W)), _resident((1, OUT_W)),
        ],
        out_specs=pl.BlockSpec((tile_b, OUT_W), lambda i: (i, 0)),
    )

    out = pl.pallas_call(
        _head_kernel,
        out_shape=jax.ShapeDtypeStruct((b_pad, OUT_W), jnp.float32),
        grid_spec=grid_spec,
        compiler_params=pltpu.CompilerParams(
            dimension_semantics=("parallel",)),   # shards batch tiles on v7x TCs
    )(cls_b, meta_b,
      hp['w1_text'], hp['w1_meta'], hp['b1'],
      hp['w2'], hp['b2'], hp['w3'], hp['b3'])

    return out[:B, :N_CLASSES]


# =============================================================================
# Deterministic parameter init (no checkpoint loading)
# =============================================================================
def _linear(key, fan_in, fan_out):
    k1, k2 = jax.random.split(key)
    bound = 1.0 / math.sqrt(fan_in)
    w = jax.random.uniform(k1, (fan_in, fan_out), jnp.float32, -bound, bound)
    b = jax.random.uniform(k2, (fan_out,), jnp.float32, -bound, bound)
    return w, b


def init_head_params(key):
    k1, k2, k3, k4 = jax.random.split(key, 4)
    # TODO(synk): SimpleHidden source not provided; assumed Linear + Tanh.
    w_text, b_text = _linear(k1, BERT_DIM, HIDDEN_DIM)   # SimpleHidden(bert_dim, 50)
    w_meta, b_meta = _linear(k2, META_DIM, META_DIM)     # SimpleHidden(4, 4)
    w_hid, b_hid = _linear(k3, H1_DIM, HIDDEN2)          # SimpleHidden(54, 25)
    w_out, b_out = _linear(k4, HIDDEN2, N_CLASSES)       # Linear(25, 2)

    # Row-blocks of the block-diagonal W1 fusion (exact):
    #   [cls | meta] @ blockdiag(W_text, W_meta) == cls @ W1_text + meta @ W1_meta
    w1_text = jnp.zeros((BERT_DIM, H1_DIM), jnp.float32).at[:, :HIDDEN_DIM].set(w_text)
    w1_meta = jnp.zeros((META_DIM, H1_DIM), jnp.float32).at[:, HIDDEN_DIM:].set(w_meta)
    b1 = jnp.concatenate([b_text, b_meta])[None, :]      # (1, 54)

    # Narrow (8-lane) zero-padded output layer; wrapper slices [:, :n_classes].
    w3 = jnp.zeros((HIDDEN2, OUT_W), jnp.float32).at[:, :N_CLASSES].set(w_out)
    b3 = jnp.zeros((1, OUT_W), jnp.float32).at[:, :N_CLASSES].set(b_out)

    return {
        'w1_text': w1_text.astype(jnp.bfloat16),
        'w1_meta': w1_meta.astype(jnp.bfloat16),
        'b1': b1,                                        # biases stay f32 (v5e)
        'w2': w_hid.astype(jnp.bfloat16), 'b2': b_hid[None, :],
        'w3': w3.astype(jnp.bfloat16), 'b3': b3,
    }


def init_bert_params(key):
    ks = jax.random.split(key, 2 + N_LAYERS)
    params = {
        'tok_emb': 0.02 * jax.random.normal(ks[0], (VOCAB, BERT_DIM), jnp.float32),
        'pos_emb': 0.02 * jax.random.normal(ks[1], (SEQ_LEN, BERT_DIM), jnp.float32),
        'layers': [],
    }
    s = 1.0 / math.sqrt(BERT_DIM)
    for i in range(N_LAYERS):
        lk = jax.random.split(ks[2 + i], 6)
        params['layers'].append({
            'wq': s * jax.random.normal(lk[0], (BERT_DIM, BERT_DIM), jnp.float32),
            'wk': s * jax.random.normal(lk[1], (BERT_DIM, BERT_DIM), jnp.float32),
            'wv': s * jax.random.normal(lk[2], (BERT_DIM, BERT_DIM), jnp.float32),
            'wo': s * jax.random.normal(lk[3], (BERT_DIM, BERT_DIM), jnp.float32),
            'w1': s * jax.random.normal(lk[4], (BERT_DIM, FFN_DIM), jnp.float32),
            'w2': (1.0 / math.sqrt(FFN_DIM))
                  * jax.random.normal(lk[5], (FFN_DIM, BERT_DIM), jnp.float32),
        })
    return params


# =============================================================================
# Synthetic BERT_Embedding (plain-JAX glue)
# =============================================================================
def bert_embedding(params, x, mask=None):
    # TODO(synk): BERT_Embedding source not provided; this is a deterministic
    # synthetic 12-layer mini-encoder reproducing the output structure the
    # forward() needs (sequence_output, pooled, last-layer CLS attention row).
    B, S = x.shape
    hd = BERT_DIM // N_HEADS
    h = params['tok_emb'][x] + params['pos_emb'][None, :S, :]
    if mask is None:
        mask = jnp.ones((B, S), jnp.float32)
    bias = (1.0 - mask.astype(jnp.float32))[:, None, None, :] * (-1e9)

    cls_att = None
    for li, lp in enumerate(params['layers']):
        def split_heads(t):
            return t.reshape(B, S, N_HEADS, hd).transpose(0, 2, 1, 3)
        q = split_heads(h @ lp['wq'])
        k = split_heads(h @ lp['wk'])
        v = split_heads(h @ lp['wv'])
        scores = jnp.einsum('bhqd,bhkd->bhqk', q, k) / math.sqrt(hd) + bias
        probs = jax.nn.softmax(scores, axis=-1)              # (B, H, S, S)
        if li == N_LAYERS - 1:
            # torch.sum(bert_rep[2][11][:, :, 0], 1): only the last layer's CLS
            # attention row is used; the head-sum fuses with this softmax in XLA.
            cls_att = jnp.sum(probs[:, :, 0, :], axis=1)     # (B, S)
        ctx = jnp.einsum('bhqk,bhkd->bhqd', probs, v)
        ctx = ctx.transpose(0, 2, 1, 3).reshape(B, S, BERT_DIM)
        h = h + ctx @ lp['wo']
        h = h + jax.nn.gelu(h @ lp['w1']) @ lp['w2']
    pooled = jnp.tanh(h[:, 0])
    return h, pooled, cls_att


# =============================================================================
# BERT_Rel_M.forward
# =============================================================================
def bert_rel_m_forward(params, batch_item, mask=None):
    x = batch_item[0]
    meta_matrix = batch_item[2]
    seq_out, _pooled, cls_att = bert_embedding(params['bert'], x, mask)
    cls_rep = seq_out[:, 0, :]                 # bert_rep[0][:, 0]   (B, BERT_DIM)
    y_hat = head_pallas(cls_rep, meta_matrix, params['head'])
    return {'y_hat': y_hat, 'cls_att': cls_att}


if __name__ == "__main__":
    key = jax.random.PRNGKey(0)
    k_bert, k_head, k_x, k_meta = jax.random.split(key, 4)
    params = {'bert': init_bert_params(k_bert), 'head': init_head_params(k_head)}

    B = 2
    x = jax.random.randint(k_x, (B, SEQ_LEN), 0, VOCAB, dtype=jnp.int32)
    meta_matrix = jax.random.normal(k_meta, (B, META_DIM), jnp.float32)
    mask = jnp.ones((B, SEQ_LEN), jnp.float32)

    batch_item = (x, None, meta_matrix)   # [0]=token ids, [2]=meta features
    fwd = jax.jit(bert_rel_m_forward)
    out = fwd(params, batch_item, mask)
    out = jax.block_until_ready(out)

    assert out['y_hat'].shape == (B, N_CLASSES)
    assert out['cls_att'].shape == (B, SEQ_LEN)
    print("KERNEL_OK")
</pallas_src>

<mosaic_0001>
module attributes {stable_mosaic.version = 11 : i64} {
  func.func @_head_kernel(%arg0: i32, %arg1: memref<8x32xbf16, #tpu.memory_space<vmem>>, %arg2: memref<8x4xbf16, #tpu.memory_space<vmem>>, %arg3: memref<32x54xbf16, #tpu.memory_space<vmem>>, %arg4: memref<4x54xbf16, #tpu.memory_space<vmem>>, %arg5: memref<1x54xf32, #tpu.memory_space<vmem>>, %arg6: memref<54x25xbf16, #tpu.memory_space<vmem>>, %arg7: memref<1x25xf32, #tpu.memory_space<vmem>>, %arg8: memref<25x8xbf16, #tpu.memory_space<vmem>>, %arg9: memref<1x8xf32, #tpu.memory_space<vmem>>, %arg10: memref<8x8xf32, #tpu.memory_space<vmem>>) attributes {dimension_semantics = [#tpu.dimension_semantics<parallel>], iteration_bounds = array<i64: 1>, scalar_prefetch = 0 : i64, scratch_operands = 0 : i64, tpu.core_type = #tpu.core_type<tc>, window_params = [{transform_indices = @transform_0, window_bounds = array<i64: 8, 32>}, {transform_indices = @transform_1, window_bounds = array<i64: 8, 4>}, {pipeline_mode = #tpu.pipeline_mode<synchronous>, transform_indices = @transform_2, window_bounds = array<i64: 32, 54>}, {pipeline_mode = #tpu.pipeline_mode<synchronous>, transform_indices = @transform_3, window_bounds = array<i64: 4, 54>}, {pipeline_mode = #tpu.pipeline_mode<synchronous>, transform_indices = @transform_4, window_bounds = array<i64: 1, 54>}, {pipeline_mode = #tpu.pipeline_mode<synchronous>, transform_indices = @transform_5, window_bounds = array<i64: 54, 25>}, {pipeline_mode = #tpu.pipeline_mode<synchronous>, transform_indices = @transform_6, window_bounds = array<i64: 1, 25>}, {pipeline_mode = #tpu.pipeline_mode<synchronous>, transform_indices = @transform_7, window_bounds = array<i64: 25, 8>}, {pipeline_mode = #tpu.pipeline_mode<synchronous>, transform_indices = @transform_8, window_bounds = array<i64: 1, 8>}, {transform_indices = @transform_9, window_bounds = array<i64: 8, 8>}]} {
    %c0 = arith.constant 0 : index
    %c0_0 = arith.constant 0 : index
    %0 = vector.load %arg1[%c0, %c0_0] : memref<8x32xbf16, #tpu.memory_space<vmem>>, vector<8x32xbf16>
    %c0_1 = arith.constant 0 : index
    %c0_2 = arith.constant 0 : index
    %1 = vector.load %arg3[%c0_1, %c0_2] : memref<32x54xbf16, #tpu.memory_space<vmem>>, vector<32x54xbf16>
    %cst = arith.constant dense<0.000000e+00> : vector<8x54xf32>
    %2 = tpu.matmul %0, %1, %cst {dimension_numbers = #tpu.dot_dimension_numbers<[1], [0], [0], [1], [0, 0, 1, 1], [], []>} : vector<8x32xbf16>, vector<32x54xbf16>, vector<8x54xf32> -> vector<8x54xf32>
    %c0_3 = arith.constant 0 : index
    %c0_4 = arith.constant 0 : index
    %3 = vector.load %arg2[%c0_3, %c0_4] : memref<8x4xbf16, #tpu.memory_space<vmem>>, vector<8x4xbf16>
    %c0_5 = arith.constant 0 : index
    %c0_6 = arith.constant 0 : index
    %4 = vector.load %arg4[%c0_5, %c0_6] : memref<4x54xbf16, #tpu.memory_space<vmem>>, vector<4x54xbf16>
    %cst_7 = arith.constant dense<0.000000e+00> : vector<8x54xf32>
    %5 = tpu.matmul %3, %4, %cst_7 {dimension_numbers = #tpu.dot_dimension_numbers<[1], [0], [0], [1], [0, 0, 1, 1], [], []>} : vector<8x4xbf16>, vector<4x54xbf16>, vector<8x54xf32> -> vector<8x54xf32>
    %6 = arith.addf %2, %5 : vector<8x54xf32>
    %c0_8 = arith.constant 0 : index
    %c0_9 = arith.constant 0 : index
    %7 = vector.load %arg5[%c0_8, %c0_9] : memref<1x54xf32, #tpu.memory_space<vmem>>, vector<1x54xf32>
    %8 = vector.broadcast %7 : vector<1x54xf32> to vector<8x54xf32>
    %9 = arith.addf %6, %8 : vector<8x54xf32>
    %10 = math.tanh %9 : vector<8x54xf32>
    %11 = arith.truncf %10 : vector<8x54xf32> to vector<8x54xbf16>
    %c0_10 = arith.constant 0 : index
    %c0_11 = arith.constant 0 : index
    %12 = vector.load %arg6[%c0_10, %c0_11] : memref<54x25xbf16, #tpu.memory_space<vmem>>, vector<54x25xbf16>
    %cst_12 = arith.constant dense<0.000000e+00> : vector<8x25xf32>
    %13 = tpu.matmul %11, %12, %cst_12 {dimension_numbers = #tpu.dot_dimension_numbers<[1], [0], [0], [1], [0, 0, 1, 1], [], []>} : vector<8x54xbf16>, vector<54x25xbf16>, vector<8x25xf32> -> vector<8x25xf32>
    %c0_13 = arith.constant 0 : index
    %c0_14 = arith.constant 0 : index
    %14 = vector.load %arg7[%c0_13, %c0_14] : memref<1x25xf32, #tpu.memory_space<vmem>>, vector<1x25xf32>
    %15 = vector.broadcast %14 : vector<1x25xf32> to vector<8x25xf32>
    %16 = arith.addf %13, %15 : vector<8x25xf32>
    %17 = math.tanh %16 : vector<8x25xf32>
    %18 = arith.truncf %17 : vector<8x25xf32> to vector<8x25xbf16>
    %c0_15 = arith.constant 0 : index
    %c0_16 = arith.constant 0 : index
    %19 = vector.load %arg8[%c0_15, %c0_16] : memref<25x8xbf16, #tpu.memory_space<vmem>>, vector<25x8xbf16>
    %cst_17 = arith.constant dense<0.000000e+00> : vector<8x8xf32>
    %20 = tpu.matmul %18, %19, %cst_17 {dimension_numbers = #tpu.dot_dimension_numbers<[1], [0], [0], [1], [0, 0, 1, 1], [], []>} : vector<8x25xbf16>, vector<25x8xbf16>, vector<8x8xf32> -> vector<8x8xf32>
    %c0_18 = arith.constant 0 : index
    %c0_19 = arith.constant 0 : index
    %21 = vector.load %arg9[%c0_18, %c0_19] : memref<1x8xf32, #tpu.memory_space<vmem>>, vector<1x8xf32>
    %22 = vector.broadcast %21 : vector<1x8xf32> to vector<8x8xf32>
    %23 = arith.addf %20, %22 : vector<8x8xf32>
    %c0_20 = arith.constant 0 : index
    %c0_21 = arith.constant 0 : index
    %24 = vector.load %arg10[%c0_20, %c0_21] : memref<8x8xf32, #tpu.memory_space<vmem>>, vector<8x8xf32>
    tpu.vector_store %arg10[%c0_20, %c0_21], %23 {strides = array<i32>} : memref<8x8xf32, #tpu.memory_space<vmem>>, vector<8x8xf32>,
    return
  }
  func.func @transform_0(%arg0: i32) -> (i32, i32) {
    %c0_i32 = arith.constant 0 : i32
    %c0_i32_0 = arith.constant 0 : i32
    return %arg0, %c0_i32 : i32, i32
  }
  func.func @transform_1(%arg0: i32) -> (i32, i32) {
    %c0_i32 = arith.constant 0 : i32
    %c0_i32_0 = arith.constant 0 : i32
    return %arg0, %c0_i32 : i32, i32
  }
  func.func @transform_2(%arg0: i32) -> (i32, i32) {
    %c0_i32 = arith.constant 0 : i32
    %c0_i32_0 = arith.constant 0 : i32
    %c0_i32_1 = arith.constant 0 : i32
    return %c0_i32, %c0_i32_0 : i32, i32
  }
  func.func @transform_3(%arg0: i32) -> (i32, i32) {
    %c0_i32 = arith.constant 0 : i32
    %c0_i32_0 = arith.constant 0 : i32
    %c0_i32_1 = arith.constant 0 : i32
    return %c0_i32, %c0_i32_0 : i32, i32
  }
  func.func @transform_4(%arg0: i32) -> (i32, i32) {
    %c0_i32 = arith.constant 0 : i32
    %c0_i32_0 = arith.constant 0 : i32
    %c0_i32_1 = arith.constant 0 : i32
    return %c0_i32, %c0_i32_0 : i32, i32
  }
  func.func @transform_5(%arg0: i32) -> (i32, i32) {
    %c0_i32 = arith.constant 0 : i32
    %c0_i32_0 = arith.constant 0 : i32
    %c0_i32_1 = arith.constant 0 : i32
    return %c0_i32, %c0_i32_0 : i32, i32
  }
  func.func @transform_6(%arg0: i32) -> (i32, i32) {
    %c0_i32 = arith.constant 0 : i32
    %c0_i32_0 = arith.constant 0 : i32
    %c0_i32_1 = arith.constant 0 : i32
    return %c0_i32, %c0_i32_0 : i32, i32
  }
  func.func @transform_7(%arg0: i32) -> (i32, i32) {
    %c0_i32 = arith.constant 0 : i32
    %c0_i32_0 = arith.constant 0 : i32
    %c0_i32_1 = arith.constant 0 : i32
    return %c0_i32, %c0_i32_0 : i32, i32
  }
  func.func @transform_8(%arg0: i32) -> (i32, i32) {
    %c0_i32 = arith.constant 0 : i32
    %c0_i32_0 = arith.constant 0 : i32
    %c0_i32_1 = arith.constant 0 : i32
    return %c0_i32, %c0_i32_0 : i32, i32
  }
  func.func @transform_9(%arg0: i32) -> (i32, i32) {
    %c0_i32 = arith.constant 0 : i32
    %c0_i32_0 = arith.constant 0 : i32
    return %arg0, %c0_i32 : i32, i32
  }
}

</mosaic_0001>

<bundles_post_ra>
// kernel: bert_rel_m_forward.1
= control target key start
LH: loop header
LB: loop body
LE: loop exit
PB: predicated region body
PF: predicated region fallthrough
CT: control target
= control target key end

     0   :  { %vm44_vm0 = vcmask 1041408   ;;  %v395_v0 = vmov 0.0   ;;  %vm396_vm1 = vmmov 0   ;;  %vm40_vm2 = vcmask 31744   ;;  %s510_s2 = inlined_call_operand.vmem [shape: bf16[32,54], index: 2, kind: input, shape index: {}]   ;;  %s511_s3 = inlined_call_operand.vmem [shape: bf16[4,54], index: 3, kind: input, shape index: {}]   ;;  %s512_s1 = inlined_call_operand.vmem [shape: bf16[8,4], index: 1, kind: input, shape index: {}]   ;;  %s513_s0 = inlined_call_operand.vmem [shape: bf16[8,32], index: 0, kind: input, shape index: {}]   ;;  %s514_s5 = inlined_call_operand.vmem [shape: bf16[54,25], index: 5, kind: input, shape index: {}]   ;;  %s515_s4 = inlined_call_operand.vmem [shape: f32[1,54], index: 4, kind: input, shape index: {}]   ;;  %s516_s7 = inlined_call_operand.vmem [shape: bf16[25,8], index: 7, kind: input, shape index: {}]   ;;  %s517_s6 = inlined_call_operand.vmem [shape: f32[1,25], index: 6, kind: input, shape index: {}]   ;;  %s518_s8 = inlined_call_operand.vmem [shape: f32[1,8], index: 8, kind: input, shape index: {}]   ;;  %s519_s9 = inlined_call_operand.vmem [shape: f32[8,8], index: 9, kind: output, shape index: {}]  }
   0x1   :  { %352 = vmatprep.subr.bf16.mxu1 %v395_v0  ;;  %346 = vmatprep.subr.bf16.mxu0 %v395_v0  ;;  %v383_v1 = vld [vmem:[%s510_s2] sm:$0xff]   ;;  %v384_v4 = vld [vmem:[%s510_s2 + $0x8] sm:$0xff]   ;;  %vm100_vm3 = vcmask 261120   ;;  %v387_v9 = vld [vmem:[%s514_s5 + $0x10] sm:$0xff]   ;;  %vm193_vm4 = vcmask 1042432   ;;  %vm189_vm5 = vcmask 441344  }
   0x2   :  { %v39_v2 = vld [vmem:[%s511_s3] sm:$0x3]  ;;  %348 = vmatprep.mubr.msk.bf16.mxu0 %vm396_vm1, %v395_v0  ;;  %356 = vmatprep.mubr.msk.bf16.mxu1 %vm396_vm1, %v395_v0  ;;  %v386_v8 = vld [vmem:[%s514_s5 + $0x8] sm:$0xff]   ;;  %v388_v10 = vld [vmem:[%s514_s5 + $0x18] ss:$0 sps:$4 sm:$0x77]  }
   0x3   :  { %353 = vmatpush3.bf16.msra.mxu1 %v383_v1  ;;  %v46_v3 = vsel %vm44_vm0, %v39_v2, 0  ;;  %v38_v5 = vld [vmem:[%s512_s1] sm:$0xf]  ;;  %v195_v11 = vsel %vm193_vm4, %v388_v10, 0  ;;  %vm265_vm6 = vcmask 1043456   ;;  %vm266_vm7 = vcmask 1044480  }
   0x4   :  { %347 = vmatpush3.bf16.msra.mxu0 %v46_v3  ;;  %354 = vmatprep.subr.bf16.mxu1 %v395_v0  ;;  %v33_v6 = vld [vmem:[%s513_s0] sm:$0xf]  ;;  %v390_v26 = vld [vmem:[%s516_s7 + $0x8] sm:$0x1f]   ;;  %v397_v27 = vmov 65535   ;;  %vm261_vm8 = vcmask 203776  }
   0x5   :  { %360 = vmatprep.subr.bf16.mxu0 %v395_v0  ;;  %v385_v7 = vld [vmem:[%s514_s5] sm:$0xff]   ;;  %v267_v28 = vsel %vm265_vm6, 4294967295, %v397_v27  ;;  %vm312_vm9 = vcmask 64512  }
   0x6   :  { %v322_v17 = vld [vmem:[%s515_s4] ss:$0 sm:$0xff]  ;;  %v268_v29 = vsel %vm266_vm7, %v267_v28, 0 }
   0x7   :  { %349 = vmatmul.mubr.msk.bf16.vlgmr.msra.gmra.mrb[0].mxu0 %vm40_vm2, %v38_v5  ;;  %355 = vmatpush3.bf16.msra.mxu1 %v384_v4  ;;  %v389_v25 = vld [vmem:[%s516_s7] sm:$0xff]   ;;  %v270_v30 = vand.u32 %v390_v26, %v268_v29 }
   0x8   :  { %368 = vmatprep.mubr.msk.bf16.mxu0 %vm396_vm1, %v395_v0  ;;  %372 = vmatprep.subr.bf16.mxu1 %v395_v0  ;;  %v323_v31 = vld [vmem:[%s517_s6] ss:$0 sm:$0xff] }
   0x9   :  { %361 = vmatpush3.bf16.msra.mxu0 %v385_v7  ;;  %v329_v39 = vld [vmem:[%s518_s8] ss:$0 sm:$0xff] }
   0xa   :  { %357 = vmatmul.mubr.msk.bf16.vlgmr.msra.gmra.mrb[0].mxu1 %vm100_vm3, %v33_v6  ;;  %362 = vmatprep.subr.bf16.mxu0 %v395_v0 }
   0xb   :  { %376 = vmatprep.mubr.msk.bf16.mxu1 %vm396_vm1, %v395_v0  ;;  %373 = vmatpush3.bf16.msra.mxu1 %v389_v25 }
   0xc   :  { %374 = vmatprep.subr.bf16.mxu1 %v395_v0 }
   0xd   :  { %363 = vmatpush3.bf16.msra.mxu0 %v386_v8 }
   0xe   :  { %364 = vmatprep.subr.bf16.mxu0 %v395_v0 }
   0xf   :  { %375 = vmatpush3.bf16.msra.mxu1 %v270_v30 }
  0x11   :  { %365 = vmatpush3.bf16.msra.mxu0 %v387_v9 }
  0x12   :  { %366 = vmatprep.subr.bf16.mxu0 %v395_v0 }
  0x15   :  { %367 = vmatpush3.bf16.msra.mxu0 %v195_v11 }
  0xda   :  { %v82_v12 = vpop.f32.mrb[0].mxu0 }
  0xdb   :  { %v350_v13 = vpop.f32.mrb[1].mxu0 }
  0xdc   :  { %v85_v14 = vpop.f32.mrb[2].mxu0 }
  0xdd   :  { %v351_v15 = vpop.f32.mrb[3].mxu0  ;;  %v138_v16 = vpop.f32.mrb[0].mxu1 }
  0xde   :  { %v139_v18 = vadd.f32 %v138_v16, %v82_v12  ;;  %v358_v19 = vpop.f32.mrb[1].mxu1 }
  0xdf   :  { %v141_v20 = vpop.f32.mrb[2].mxu1 }
  0xe0   :  { %v151_v21 = vadd.f32 %v322_v17, %v139_v18  ;;  %v359_v22 = vpop.f32.mrb[3].mxu1 }
  0xe2   :  { %391 = vtanh.f32 %v151_v21 }
  0xec   :  { %v392_v23 = vpop.eup %391 }
  0xed   :  { %v153_v24 = vpack.c.bf16 %v392_v23, %v392_v23 }
  0xef   :  { %369 = vmatmul.mubr.msk.bf16.vlgmr.msra.gmra.mrb[4].mxu0 %vm189_vm5, %v153_v24 }
 0x1c2   :  { %v231_v32 = vpop.f32.mrb[4].mxu0 }
 0x1c3   :  { %v232_v33 = vadd.f32 %v323_v31, %v231_v32  ;;  %v370_v34 = vpop.f32.mrb[5].mxu0 }
 0x1c4   :  { %v234_v35 = vpop.f32.mrb[6].mxu0 }
 0x1c5   :  { %393 = vtanh.f32 %v232_v33  ;;  %v371_v36 = vpop.f32.mrb[7].mxu0 }
 0x1cf   :  { %v394_v37 = vpop.eup %393 }
 0x1d0   :  { %v238_v38 = vpack.c.bf16 %v394_v37, %v394_v37 }
 0x1d2   :  { %377 = vmatmul.mubr.msk.bf16.vlgmr.msra.gmra.mrb[4].mxu1 %vm261_vm8, %v238_v38 }
 0x2a5   :  { %v306_v40 = vpop.f32.mrb[4].mxu1 }
 0x2a6   :  { %v307_v41 = vadd.f32 %v329_v39, %v306_v40  ;;  %v378_v42 = vpop.f32.mrb[5].mxu1 }
 0x2a7   :  { %v309_v43 = vpop.f32.mrb[6].mxu1 }
 0x2a8   :  { %313 = vst.msk [vmem:[%s519_s9] sm:$0xff] %vm312_vm9, %v307_v41  ;;  %v379_v44 = vpop.f32.mrb[7].mxu1 }

</bundles_post_ra>
